<compile_context>
chip_gen: v7x
topology: tpu7x:2x2x1
jax: 0.10.0
libtpu: 0.0.40
codegen_flags: <defaults>
</compile_context>

<pallas_src>
import functools

import jax
import jax.numpy as jnp
from jax.experimental import pallas as pl
from jax.experimental.pallas import tpu as pltpu


def _round_up(x, m):
    return ((x + m - 1) // m) * m


def _biaffine_kernel(x1_ref, x2_ref, wb_ref, sel_ref, wl1_ref, wl2_ref,
                     bias_ref, out_ref, *, out_features):
    """One batch tile: fused bilinear + linear + bias, all lane-dense."""
    x1 = x1_ref[...]                                   # (TB, D)   bf16
    x2 = x2_ref[...]                                   # (TB, D)   bf16

    # ---- bilinear term: one big lane-dense matmul + segment-sum matmul ----
    t = jnp.dot(x1, wb_ref[...],
                preferred_element_type=jnp.float32)    # (TB, O*D) f32
    x2_rep = jnp.concatenate([x2] * out_features,
                             axis=-1).astype(jnp.float32)  # (TB, O*D)
    y = t * x2_rep                                     # (TB, O*D) f32 (VPU)
    bil = jnp.dot(y, sel_ref[...],
                  preferred_element_type=jnp.float32)  # (TB, O_pad) f32

    # ---- linear term on the padded (lane-dense) output width ----
    lin = (jnp.dot(x1, wl1_ref[...], preferred_element_type=jnp.float32)
           + jnp.dot(x2, wl2_ref[...], preferred_element_type=jnp.float32)
           + bias_ref[...])                            # (TB, O_pad) f32

    out_ref[...] = (bil + lin).astype(out_ref.dtype)


def biaffine_attention(x1, x2, w_bilinear, w_linear, b_linear,
                       *, batch_tile=None, compute_dtype=jnp.bfloat16):
    """x1, x2: (B, D); w_bilinear: (O, D, D); w_linear: (O, 2D); b_linear: (O,)."""
    B, D = x1.shape
    O = w_bilinear.shape[0]
    OD = O * D
    O_pad = _round_up(O, 128)

    # Batch tiling: many grid steps -> DMA/compute overlap + v7x megacore.
    # VMEM-aware default: the three f32 intermediates of width O*D dominate,
    # so cap the tile to ~24 MiB of intermediate per step (fits v7x 64 MiB
    # alongside resident weights and double-buffered input tiles).
    if batch_tile is None:
        budget_bytes = 24 << 20
        per_row_bytes = max(1, 3 * OD * 4)
        bt = max(8, min(512, (budget_bytes // per_row_bytes) // 8 * 8))
        batch_tile = min(bt, _round_up(B, 8))
    batch_tile = max(8, _round_up(batch_tile, 8))
    B_pad = _round_up(B, batch_tile)

    if B_pad != B:
        pad = ((0, B_pad - B), (0, 0))
        x1 = jnp.pad(x1, pad)
        x2 = jnp.pad(x2, pad)
    x1c = x1.astype(compute_dtype)
    x2c = x2.astype(compute_dtype)

    # Bilinear weight (O, D, D) -> (D, O*D), Wb2[i, o*D + j] = Wb[o, i, j].
    wb2 = jnp.transpose(w_bilinear, (1, 0, 2)).reshape(D, OD).astype(compute_dtype)

    # 0/1 segment-sum matrix: S[o*D + j, o] = 1 (kept f32 so the sum is exact).
    rows = jnp.arange(OD)
    sel = jnp.zeros((OD, O_pad), jnp.float32).at[rows, rows // D].set(1.0)

    # Linear weight (O, 2D) -> two pre-split, transposed, zero-padded (D, O_pad).
    wl1 = jnp.zeros((D, O_pad), compute_dtype).at[:, :O].set(
        w_linear[:, :D].T.astype(compute_dtype))
    wl2 = jnp.zeros((D, O_pad), compute_dtype).at[:, :O].set(
        w_linear[:, D:].T.astype(compute_dtype))
    bias = jnp.zeros((1, O_pad), jnp.float32).at[0, :O].set(
        b_linear.astype(jnp.float32))

    kernel = functools.partial(_biaffine_kernel, out_features=O)

    out = pl.pallas_call(
        kernel,
        out_shape=jax.ShapeDtypeStruct((B_pad, O_pad), jnp.float32),
        grid_spec=pltpu.PrefetchScalarGridSpec(
            num_scalar_prefetch=0,
            grid=(B_pad // batch_tile,),
            in_specs=[
                pl.BlockSpec((batch_tile, D), lambda i: (i, 0)),   # x1 tile
                pl.BlockSpec((batch_tile, D), lambda i: (i, 0)),   # x2 tile
                pl.BlockSpec((D, OD), lambda i: (0, 0)),           # bilinear W (resident)
                pl.BlockSpec((OD, O_pad), lambda i: (0, 0)),       # segment-sum S (resident)
                pl.BlockSpec((D, O_pad), lambda i: (0, 0)),        # linear W (x1 half)
                pl.BlockSpec((D, O_pad), lambda i: (0, 0)),        # linear W (x2 half)
                pl.BlockSpec((1, O_pad), lambda i: (0, 0)),        # bias
            ],
            out_specs=pl.BlockSpec((batch_tile, O_pad), lambda i: (i, 0)),
        ),
        compiler_params=pltpu.CompilerParams(
            dimension_semantics=("parallel",),
            vmem_limit_bytes=48 << 20,   # stays inside v7x's 64 MiB physical VMEM
        ),
    )(x1c, x2c, wb2, sel, wl1, wl2, bias)

    # Strip batch padding and the lane padding of the output features.
    return out[:B, :O]


def biaffine_attention_ref(x1, x2, w_bilinear, w_linear, b_linear):
    """Pure-JAX reference with PyTorch nn.Bilinear / nn.Linear semantics."""
    bil = jnp.einsum("bi,oij,bj->bo", x1, w_bilinear, x2)
    cat = jnp.concatenate([x1, x2], axis=-1)
    return bil + cat @ w_linear.T + b_linear


if __name__ == "__main__":
    # Small shapes consistent with the module: seq(batch)=8, in_features=32, out_features=8
    B, D, O = 8, 32, 8

    key = jax.random.PRNGKey(0)
    k1, k2, k3, k4, k5 = jax.random.split(key, 5)

    x1 = jax.random.normal(k1, (B, D), dtype=jnp.float32)
    x2 = jax.random.normal(k2, (B, D), dtype=jnp.float32)

    # Deterministic parameter init (uniform, roughly matching PyTorch bound scales).
    bound_bil = 1.0 / (D ** 0.5)
    bound_lin = 1.0 / ((2 * D) ** 0.5)
    w_bilinear = jax.random.uniform(k3, (O, D, D), jnp.float32, -bound_bil, bound_bil)
    w_linear = jax.random.uniform(k4, (O, 2 * D), jnp.float32, -bound_lin, bound_lin)
    b_linear = jax.random.uniform(k5, (O,), jnp.float32, -bound_lin, bound_lin)

    out = biaffine_attention(x1, x2, w_bilinear, w_linear, b_linear)
    out = jax.block_until_ready(out)
    assert out.shape == (B, O)

    # Check against a reference at the kernel's compute precision
    # (bf16-rounded inputs/weights, f32 accumulation).
    def _r(a):
        return a.astype(jnp.bfloat16).astype(jnp.float32)

    ref_bf16 = biaffine_attention_ref(_r(x1), _r(x2), _r(w_bilinear), _r(w_linear), b_linear)
    assert jnp.allclose(out, ref_bf16, atol=5e-2, rtol=5e-2), "mismatch vs bf16-rounded reference"

    # Loose sanity check against the full-f32 reference (bf16 input rounding only).
    ref_f32 = biaffine_attention_ref(x1, x2, w_bilinear, w_linear, b_linear)
    assert jnp.allclose(out, ref_f32, atol=5e-1, rtol=1e-1), "mismatch vs f32 reference"

    print("KERNEL_OK")
</pallas_src>

<mosaic_0001>
module attributes {stable_mosaic.version = 11 : i64} {
  func.func @_biaffine_kernel(%arg0: i32, %arg1: memref<8x32xbf16, #tpu.memory_space<vmem>>, %arg2: memref<8x32xbf16, #tpu.memory_space<vmem>>, %arg3: memref<32x256xbf16, #tpu.memory_space<vmem>>, %arg4: memref<256x128xf32, #tpu.memory_space<vmem>>, %arg5: memref<32x128xbf16, #tpu.memory_space<vmem>>, %arg6: memref<32x128xbf16, #tpu.memory_space<vmem>>, %arg7: memref<1x128xf32, #tpu.memory_space<vmem>>, %arg8: memref<8x128xf32, #tpu.memory_space<vmem>>) attributes {dimension_semantics = [#tpu.dimension_semantics<parallel>], iteration_bounds = array<i64: 1>, scalar_prefetch = 0 : i64, scratch_operands = 0 : i64, tpu.core_type = #tpu.core_type<tc>, window_params = [{transform_indices = @transform_0, window_bounds = array<i64: 8, 32>}, {transform_indices = @transform_1, window_bounds = array<i64: 8, 32>}, {pipeline_mode = #tpu.pipeline_mode<synchronous>, transform_indices = @transform_2, window_bounds = array<i64: 32, 256>}, {pipeline_mode = #tpu.pipeline_mode<synchronous>, transform_indices = @transform_3, window_bounds = array<i64: 256, 128>}, {pipeline_mode = #tpu.pipeline_mode<synchronous>, transform_indices = @transform_4, window_bounds = array<i64: 32, 128>}, {pipeline_mode = #tpu.pipeline_mode<synchronous>, transform_indices = @transform_5, window_bounds = array<i64: 32, 128>}, {pipeline_mode = #tpu.pipeline_mode<synchronous>, transform_indices = @transform_6, window_bounds = array<i64: 1, 128>}, {transform_indices = @transform_7, window_bounds = array<i64: 8, 128>}]} {
    %c0 = arith.constant 0 : index
    %c0_0 = arith.constant 0 : index
    %0 = vector.load %arg1[%c0, %c0_0] : memref<8x32xbf16, #tpu.memory_space<vmem>>, vector<8x32xbf16>
    %c0_1 = arith.constant 0 : index
    %c0_2 = arith.constant 0 : index
    %1 = vector.load %arg2[%c0_1, %c0_2] : memref<8x32xbf16, #tpu.memory_space<vmem>>, vector<8x32xbf16>
    %c0_3 = arith.constant 0 : index
    %c0_4 = arith.constant 0 : index
    %2 = vector.load %arg3[%c0_3, %c0_4] : memref<32x256xbf16, #tpu.memory_space<vmem>>, vector<32x256xbf16>
    %cst = arith.constant dense<0.000000e+00> : vector<8x256xf32>
    %3 = tpu.matmul %0, %2, %cst {dimension_numbers = #tpu.dot_dimension_numbers<[1], [0], [0], [1], [0, 0, 1, 1], [], []>} : vector<8x32xbf16>, vector<32x256xbf16>, vector<8x256xf32> -> vector<8x256xf32>
    %4 = tpu.concatenate %1, %1, %1, %1, %1, %1, %1, %1 in 1 : vector<8x32xbf16>, vector<8x32xbf16>, vector<8x32xbf16>, vector<8x32xbf16>, vector<8x32xbf16>, vector<8x32xbf16>, vector<8x32xbf16>, vector<8x32xbf16> -> vector<8x256xbf16>
    %5 = arith.extf %4 : vector<8x256xbf16> to vector<8x256xf32>
    %6 = arith.mulf %3, %5 : vector<8x256xf32>
    %c0_5 = arith.constant 0 : index
    %c0_6 = arith.constant 0 : index
    %7 = vector.load %arg4[%c0_5, %c0_6] : memref<256x128xf32, #tpu.memory_space<vmem>>, vector<256x128xf32>
    %cst_7 = arith.constant dense<0.000000e+00> : vector<8x128xf32>
    %8 = tpu.matmul %6, %7, %cst_7 {dimension_numbers = #tpu.dot_dimension_numbers<[1], [0], [0], [1], [0, 0, 1, 1], [], []>} : vector<8x256xf32>, vector<256x128xf32>, vector<8x128xf32> -> vector<8x128xf32>
    %c0_8 = arith.constant 0 : index
    %c0_9 = arith.constant 0 : index
    %9 = vector.load %arg5[%c0_8, %c0_9] : memref<32x128xbf16, #tpu.memory_space<vmem>>, vector<32x128xbf16>
    %cst_10 = arith.constant dense<0.000000e+00> : vector<8x128xf32>
    %10 = tpu.matmul %0, %9, %cst_10 {dimension_numbers = #tpu.dot_dimension_numbers<[1], [0], [0], [1], [0, 0, 1, 1], [], []>} : vector<8x32xbf16>, vector<32x128xbf16>, vector<8x128xf32> -> vector<8x128xf32>
    %c0_11 = arith.constant 0 : index
    %c0_12 = arith.constant 0 : index
    %11 = vector.load %arg6[%c0_11, %c0_12] : memref<32x128xbf16, #tpu.memory_space<vmem>>, vector<32x128xbf16>
    %cst_13 = arith.constant dense<0.000000e+00> : vector<8x128xf32>
    %12 = tpu.matmul %1, %11, %cst_13 {dimension_numbers = #tpu.dot_dimension_numbers<[1], [0], [0], [1], [0, 0, 1, 1], [], []>} : vector<8x32xbf16>, vector<32x128xbf16>, vector<8x128xf32> -> vector<8x128xf32>
    %13 = arith.addf %10, %12 : vector<8x128xf32>
    %c0_14 = arith.constant 0 : index
    %c0_15 = arith.constant 0 : index
    %14 = vector.load %arg7[%c0_14, %c0_15] : memref<1x128xf32, #tpu.memory_space<vmem>>, vector<1x128xf32>
    %15 = vector.broadcast %14 : vector<1x128xf32> to vector<8x128xf32>
    %16 = arith.addf %13, %15 : vector<8x128xf32>
    %17 = arith.addf %8, %16 : vector<8x128xf32>
    %c0_16 = arith.constant 0 : index
    %c0_17 = arith.constant 0 : index
    %18 = vector.load %arg8[%c0_16, %c0_17] : memref<8x128xf32, #tpu.memory_space<vmem>>, vector<8x128xf32>
    tpu.vector_store %arg8[%c0_16, %c0_17], %17 {strides = array<i32>} : memref<8x128xf32, #tpu.memory_space<vmem>>, vector<8x128xf32>,
    return
  }
  func.func @transform_0(%arg0: i32) -> (i32, i32) {
    %c0_i32 = arith.constant 0 : i32
    %c0_i32_0 = arith.constant 0 : i32
    return %arg0, %c0_i32 : i32, i32
  }
  func.func @transform_1(%arg0: i32) -> (i32, i32) {
    %c0_i32 = arith.constant 0 : i32
    %c0_i32_0 = arith.constant 0 : i32
    return %arg0, %c0_i32 : i32, i32
  }
  func.func @transform_2(%arg0: i32) -> (i32, i32) {
    %c0_i32 = arith.constant 0 : i32
    %c0_i32_0 = arith.constant 0 : i32
    %c0_i32_1 = arith.constant 0 : i32
    return %c0_i32, %c0_i32_0 : i32, i32
  }
  func.func @transform_3(%arg0: i32) -> (i32, i32) {
    %c0_i32 = arith.constant 0 : i32
    %c0_i32_0 = arith.constant 0 : i32
    %c0_i32_1 = arith.constant 0 : i32
    return %c0_i32, %c0_i32_0 : i32, i32
  }
  func.func @transform_4(%arg0: i32) -> (i32, i32) {
    %c0_i32 = arith.constant 0 : i32
    %c0_i32_0 = arith.constant 0 : i32
    %c0_i32_1 = arith.constant 0 : i32
    return %c0_i32, %c0_i32_0 : i32, i32
  }
  func.func @transform_5(%arg0: i32) -> (i32, i32) {
    %c0_i32 = arith.constant 0 : i32
    %c0_i32_0 = arith.constant 0 : i32
    %c0_i32_1 = arith.constant 0 : i32
    return %c0_i32, %c0_i32_0 : i32, i32
  }
  func.func @transform_6(%arg0: i32) -> (i32, i32) {
    %c0_i32 = arith.constant 0 : i32
    %c0_i32_0 = arith.constant 0 : i32
    %c0_i32_1 = arith.constant 0 : i32
    return %c0_i32, %c0_i32_0 : i32, i32
  }
  func.func @transform_7(%arg0: i32) -> (i32, i32) {
    %c0_i32 = arith.constant 0 : i32
    %c0_i32_0 = arith.constant 0 : i32
    return %arg0, %c0_i32 : i32, i32
  }
}

</mosaic_0001>

<bundles_post_ra>
// kernel: tpu_custom_call.1
= control target key start
LH: loop header
LB: loop body
LE: loop exit
PB: predicated region body
PF: predicated region fallthrough
CT: control target
= control target key end

     0   :  { %12 = vsyncpa [#allocation3], 0  ;;  %s852_s0 = inlined_call_operand.hbm [shape: bf16[8,32], index: 0, kind: input, shape index: {}]   ;;  %s853_s1 = inlined_call_operand.hbm [shape: bf16[8,32], index: 1, kind: input, shape index: {}]   ;;  %s854_s2 = inlined_call_operand.hbm [shape: bf16[32,256], index: 2, kind: input, shape index: {}]   ;;  %s855_s3 = inlined_call_operand.hbm [shape: f32[256,128], index: 3, kind: input, shape index: {}]   ;;  %s856_s4 = inlined_call_operand.hbm [shape: bf16[32,128], index: 4, kind: input, shape index: {}]   ;;  %s857_s5 = inlined_call_operand.vmem [shape: bf16[32,128], index: 5, kind: input, shape index: {}]   ;;  %s858_s6 = inlined_call_operand.vmem [shape: f32[1,128], index: 6, kind: input, shape index: {}]   ;;  %s859_s7 = inlined_call_operand.hbm [shape: f32[8,128], index: 7, kind: output, shape index: {}]  }
   0x1   :  { %13 = vsyncpa [#allocation6], 0 }
   0x2   :  { %14 = vsyncpa [#allocation9], 0 }
   0x3   :  { %15 = vsyncpa [#allocation4], 0  ;;  %s695_s24 = smov [#allocation5]   ;;  %s555_s28 = scalar_lea.hbm %s853_s1, 64 }
   0x4   :  { %s32_s25 = sshll.u32 %s695_s24, 4  ;;  %p556_p0 = scmp.ne.s32.totalorder %s853_s1, %s555_s28  ;;  %s33_s25 = int_to_ptr.vmem [resolvable:$true] %s32_s25 }
   0x5   :  { %p559_p1 = scmp.lt.u32.totalorder %s555_s28, %s853_s1 }
   0x7   :  { %p561_p2 = pnand %p559_p1, %p556_p0 }
   0x9   :  { %564 = shalt.err (!%p561_p2)
}
   0xa   :  { %s565_s10 = scalar_lea.vmem %s33_s25, 64  ;;  %p570_p4 = scmp.lt.s32.totalorder %s33_s25, %s33_s25 }
   0xb   :  { %p566_p3 = scmp.ne.s32.totalorder %s33_s25, %s565_s10  ;;  %p571_p5 = scmp.lt.s32.totalorder %s565_s10, %s565_s10 }
   0xd   :  { %p572_p6 = por %p571_p5, %p570_p4 }
   0xf   :  { %p573_p7 = pnand %p572_p6, %p566_p3 }
  0x11   :  { %576 = shalt.err (!%p573_p7)
}
  0x12   :  { %35 = dma.hbm_to_vmem [thread:$0]  %s853_s1, 64, %s33_s25, [#allocation6]  }
  0x13   :  { %s696_s13 = smov [#allocation8]   ;;  %s697_s15 = smov [#allocation2]  }
  0x14   :  { %s53_s14 = sshll.u32 %s696_s13, 4  ;;  %s22_s16 = sshll.u32 %s697_s15, 4  ;;  %s54_s14 = int_to_ptr.vmem [resolvable:$true] %s53_s14  ;;  %s23_s16 = int_to_ptr.vmem [resolvable:$true] %s22_s16 }
  0x15   :  { %s577_s19 = scalar_lea.hbm %s855_s3, 4096 }
  0x16   :  { %p578_p8 = scmp.ne.s32.totalorder %s855_s3, %s577_s19  ;;  %p581_p9 = scmp.lt.u32.totalorder %s577_s19, %s855_s3 }
  0x18   :  { %p583_p10 = pnand %p581_p9, %p578_p8 }
  0x1a   :  { %586 = shalt.err (!%p583_p10)
}
  0x1b   :  { %s587_s1 = scalar_lea.vmem %s54_s14, 4096  ;;  %p592_p12 = scmp.lt.s32.totalorder %s54_s14, %s54_s14 }
  0x1c   :  { %p588_p11 = scmp.ne.s32.totalorder %s54_s14, %s587_s1  ;;  %p593_p13 = scmp.lt.s32.totalorder %s587_s1, %s587_s1 }
  0x1e   :  { %p594_p0 = por %p593_p13, %p592_p12 }
  0x20   :  { %p595_p1 = pnand %p594_p0, %p588_p11 }
  0x22   :  { %598 = shalt.err (!%p595_p1)
}
  0x23   :  { %s698_s24 = smov 128   ;;  %s699_s25 = smov 8  }
  0x24   :  { %59 = dma.hbm_to_vmem [thread:$0]  %s855_s3, 4096, %s54_s14, [#allocation9], %s698_s24, %s698_s24, %s699_s25  }
  0x25   :  { %s599_s30 = scalar_lea.hbm %s852_s0, 64 }
  0x26   :  { %p600_p2 = scmp.ne.s32.totalorder %s852_s0, %s599_s30  ;;  %p603_p3 = scmp.lt.u32.totalorder %s599_s30, %s852_s0 }
  0x28   :  { %p605_p4 = pnand %p603_p3, %p600_p2 }
  0x2a   :  { %608 = shalt.err (!%p605_p4)
}
  0x2b   :  { %s609_s12 = scalar_lea.vmem %s23_s16, 64  ;;  %p614_p6 = scmp.lt.s32.totalorder %s23_s16, %s23_s16 }
  0x2c   :  { %p610_p5 = scmp.ne.s32.totalorder %s23_s16, %s609_s12  ;;  %p615_p7 = scmp.lt.s32.totalorder %s609_s12, %s609_s12 }
  0x2e   :  { %p616_p8 = por %p615_p7, %p614_p6 }
  0x30   :  { %p617_p9 = pnand %p616_p8, %p610_p5 }
  0x32   :  { %620 = shalt.err (!%p617_p9)
}
  0x33   :  { %25 = dma.hbm_to_vmem [thread:$0]  %s852_s0, 64, %s23_s16, [#allocation3]  }
  0x34   :  { %s700_s14 = smov [#allocation7]   ;;  %s701_s17 = smov [#allocation10]  }
  0x35   :  { %s41_s15 = sshll.u32 %s700_s14, 4  ;;  %s65_s18 = sshll.u32 %s701_s17, 4  ;;  %s42_s15 = int_to_ptr.vmem [resolvable:$true] %s41_s15  ;;  %s66_s18 = int_to_ptr.vmem [resolvable:$true] %s65_s18 }
  0x36   :  { %s621_s21 = scalar_lea.hbm %s854_s2, 512 }
  0x37   :  { %p622_p10 = scmp.ne.s32.totalorder %s854_s2, %s621_s21  ;;  %p625_p11 = scmp.lt.u32.totalorder %s621_s21, %s854_s2 }
  0x39   :  { %p627_p12 = pnand %p625_p11, %p622_p10 }
  0x3b   :  { %630 = shalt.err (!%p627_p12)
}
  0x3c   :  { %s631_s0 = scalar_lea.vmem %s42_s15, 512  ;;  %p636_p0 = scmp.lt.s32.totalorder %s42_s15, %s42_s15 }
  0x3d   :  { %p632_p13 = scmp.ne.s32.totalorder %s42_s15, %s631_s0  ;;  %p637_p1 = scmp.lt.s32.totalorder %s631_s0, %s631_s0 }
  0x3f   :  { %p638_p2 = por %p637_p1, %p636_p0 }
  0x41   :  { %p639_p3 = pnand %p638_p2, %p632_p13 }
  0x43   :  { %642 = shalt.err (!%p639_p3)
}
  0x44   :  { %47 = dma.hbm_to_vmem [thread:$0]  %s854_s2, 512, %s42_s15, [#allocation6], %s698_s24, %s698_s24, %s699_s25  }
  0x45   :  { %s643_s30 = scalar_lea.hbm %s856_s4, 256 }
  0x46   :  { %p644_p4 = scmp.ne.s32.totalorder %s856_s4, %s643_s30  ;;  %p647_p5 = scmp.lt.u32.totalorder %s643_s30, %s856_s4 }
  0x48   :  { %p649_p6 = pnand %p647_p5, %p644_p4 }
  0x4a   :  { %652 = shalt.err (!%p649_p6)
}
  0x4b   :  { %s653_s12 = scalar_lea.vmem %s66_s18, 256  ;;  %p658_p8 = scmp.lt.s32.totalorder %s66_s18, %s66_s18 }
  0x4c   :  { %p654_p7 = scmp.ne.s32.totalorder %s66_s18, %s653_s12  ;;  %p659_p9 = scmp.lt.s32.totalorder %s653_s12, %s653_s12 }
  0x4e   :  { %p660_p10 = por %p659_p9, %p658_p8 }
  0x50   :  { %p661_p11 = pnand %p660_p10, %p654_p7 }
  0x52   :  { %664 = shalt.err (!%p661_p11)
}
  0x53   :  { %s702_s2 = smov 64   ;;  %s703_s24 = smov 4  }
  0x54   :  { %71 = dma.hbm_to_vmem [thread:$0]  %s856_s4, 256, %s66_s18, [#allocation9], %s702_s2, %s702_s2, %s703_s24  }
  0x55   :  { %687 = dma.done.wait [#allocation3], 64  }
  0x56   :  { %688 = vsyncadd [#allocation3], 4294967232 }
  0x57   :  { %689 = dma.done.wait [#allocation6], 576  }
  0x58   :  { %690 = vsyncadd [#allocation6], 4294966720 }
  0x59   :  { %691 = dma.done.wait [#allocation9], 4352  }
  0x5a   :  { %692 = vsyncadd [#allocation9], 4294962944  ;;  %v704_v0 = vmov 0   ;;  %v544_v1 = vld [vmem:[#allocation7 + $0x4] ss:$8 sps:$4 sm:$0xff]   ;;  %v203_v12 = vld [vmem:[#allocation8 + $0x90] sm:$0xff] }
  0x5b   :  { %154 = vmatprep.mubr.bf16.mxu0 %v704_v0  ;;  %v546_v2 = vld [vmem:[#allocation7] ss:$8 sps:$4 sm:$0xff]   ;;  %122 = vmatprep.subr.bf16.mxu0 %v544_v1  ;;  %v547_v3 = vld [vmem:[#allocation7 + $0x14] ss:$8 sps:$4 sm:$0xff]   ;;  %v549_v4 = vld [vmem:[#allocation7 + $0x10] ss:$8 sps:$4 sm:$0xff]  }
  0x5c   :  { %123 = vmatpush1.bf16.msra.mxu0 %v546_v2  ;;  %v818_v5 = vld [vmem:[#allocation5] sm:$0xf]  ;;  %v201_v6 = vld [vmem:[#allocation8 + $0x80] sm:$0xff]  ;;  %v202_v7 = vld [vmem:[#allocation8 + $0x88] sm:$0xff]  ;;  %s705_s4 = smov 32   ;;  %s706_s13 = smov 96  }
  0x5d   :  { %124 = vmatprep.subr.bf16.mxu0 %v547_v3  ;;  %v432_v8 = vcombine.low %v818_v5, %v818_v5  ;;  %v497_v9 = vpack.c.bf16 %v202_v7, %v201_v6  ;;  %v185_v10 = vld [vmem:[#allocation8] sm:$0xff]  ;;  %v186_v11 = vld [vmem:[#allocation8 + $0x8] sm:$0xff]  ;;  %v204_v14 = vld [vmem:[#allocation8 + $0x98] sm:$0xff]  ;;  %vm118_vm0 = vcmask 261120   ;;  %v707_v23 = vmov 0.0   ;;  %s709_s20 = smov [#allocation11]  }
  0x5e   :  { %v499_v13 = vpack.c.bf16 %v186_v11, %v185_v10  ;;  %v187_v15 = vld [vmem:[#allocation8 + $0x10] sm:$0xff]  ;;  %v188_v16 = vld [vmem:[#allocation8 + $0x18] sm:$0xff]  ;;  %v501_v17 = vpack.c.bf16 %v204_v14, %v203_v12  ;;  %v205_v18 = vld [vmem:[#allocation8 + $0xa0] sm:$0xff]  ;;  %vm708_vm1 = vmmov 0   ;;  %vm175_vm2 = vcmask 523264   ;;  %s416_s21 = sshll.u32 %s709_s20, 4  ;;  %s417_s21 = int_to_ptr.vmem [resolvable:$true] %s416_s21 }
  0x5f   :  { %166 = vrot.lane.b32.xlu0 %v432_v8, %s705_s4  ;;  %170 = vrot.lane.b32.xlu1 %v432_v8, %s706_s13  ;;  %v92_v19 = vld [vmem:[#allocation2] sm:$0xf]  ;;  %v551_v20 = vld [vmem:[%s857_s5] sm:$0xff]   ;;  %v503_v22 = vpack.c.bf16 %v188_v16, %v187_v15  ;;  %v189_v25 = vld [vmem:[#allocation8 + $0x20] sm:$0xff]  ;;  %vm178_vm3 = vcmask 785408   ;;  %s665_s22 = scalar_lea.vmem %s417_s21, 128  ;;  %p670_p13 = scmp.lt.s32.totalorder %s417_s21, %s417_s21 }
  0x60   :  { %125 = vmatpush1.bf16.msra.mxu0 %v549_v4  ;;  %498 = vmatprep.subr.bf16.mxu1 %v497_v9  ;;  %v206_v21 = vld [vmem:[#allocation8 + $0xa8] sm:$0xff]  ;;  %v207_v27 = vld [vmem:[#allocation8 + $0xb0] sm:$0xff]  ;;  %v208_v28 = vld [vmem:[#allocation8 + $0xb8] sm:$0xff]  ;;  %p666_p12 = scmp.ne.s32.totalorder %s417_s21, %s665_s22  ;;  %p671_p0 = scmp.lt.s32.totalorder %s665_s22, %s665_s22 }
  0x61   :  { %500 = vmatpush3.bf16.msra.mxu1 %v499_v13  ;;  %481 = vmatprep.subr.bf16.mxu0 %v707_v23  ;;  %v505_v24 = vpack.c.bf16 %v206_v21, %v205_v18  ;;  %v190_v26 = vld [vmem:[#allocation8 + $0x28] sm:$0xff]  ;;  %v552_v29 = vld [vmem:[%s857_s5 + $0x8] sm:$0xff]   ;;  %v509_v32 = vpack.c.bf16 %v208_v28, %v207_v27  ;;  %v192_v33 = vld [vmem:[#allocation8 + $0x38] sm:$0xff] }
  0x62   :  { %502 = vmatprep.subr.bf16.mxu1 %v501_v17  ;;  %v507_v30 = vpack.c.bf16 %v190_v26, %v189_v25  ;;  %v191_v31 = vld [vmem:[#allocation8 + $0x30] sm:$0xff]  ;;  %v209_v34 = vld [vmem:[#allocation8 + $0xc0] sm:$0xff]  ;;  %v210_v35 = vld [vmem:[#allocation8 + $0xc8] sm:$0xff]  ;;  %p672_p1 = por %p671_p0, %p670_p13 }
  0x63   :  { %431 = vmatmul.mubr.msk.bf16.vlgmr.msra.gmra.mrb[0].mxu0 %vm118_vm0, %v92_v19  ;;  %168 = vrot.lane.b32.xlu0 %v432_v8, %s702_s2  ;;  %v553_v36 = vld [vmem:[#allocation10] sm:$0xff]   ;;  %v511_v37 = vpack.c.bf16 %v192_v33, %v191_v31  ;;  %v513_v38 = vpack.c.bf16 %v210_v35, %v209_v34  ;;  %v194_v40 = vld [vmem:[#allocation8 + $0x48] sm:$0xff]  ;;  %v211_v41 = vld [vmem:[#allocation8 + $0xd0] sm:$0xff] }
  0x64   :  { %482 = vmatpush3.bf16.msra.mxu0 %v551_v20  ;;  %485 = vmatprep.mubr.msk.bf16.mxu0 %vm708_vm1, %v707_v23  ;;  %v193_v39 = vld [vmem:[#allocation8 + $0x40] sm:$0xff]  ;;  %v212_v42 = vld [vmem:[#allocation8 + $0xd8] sm:$0xff]  ;;  %v554_v43 = vld [vmem:[#allocation10 + $0x8] sm:$0xff]   ;;  %p673_p2 = pnand %p672_p1, %p666_p12 }
  0x65   :  { %504 = vmatpush3.bf16.msra.mxu1 %v503_v22  ;;  %483 = vmatprep.subr.bf16.mxu0 %v707_v23  ;;  %v515_v44 = vpack.c.bf16 %v194_v40, %v193_v39  ;;  %v517_v45 = vpack.c.bf16 %v212_v42, %v211_v41  ;;  %v195_v46 = vld [vmem:[#allocation8 + $0x50] sm:$0xff]  ;;  %v196_v47 = vld [vmem:[#allocation8 + $0x58] sm:$0xff]  ;;  %v213_v48 = vld [vmem:[#allocation8 + $0xe0] sm:$0xff] }
  0x66   :  { %506 = vmatprep.subr.bf16.mxu1 %v505_v24  ;;  %v214_v49 = vld [vmem:[#allocation8 + $0xe8] sm:$0xff]  ;;  %v519_v50 = vpack.c.bf16 %v196_v47, %v195_v46  ;;  %v197_v52 = vld [vmem:[#allocation8 + $0x60] sm:$0xff]  ;;  %v215_v55 = vld [vmem:[#allocation8 + $0xf0] sm:$0xff] }
  0x67   :  { %v521_v51 = vpack.c.bf16 %v214_v49, %v213_v48  ;;  %v198_v53 = vld [vmem:[#allocation8 + $0x68] sm:$0xff]  ;;  %v216_v56 = vld [vmem:[#allocation8 + $0xf8] sm:$0xff]  ;;  %v199_v58 = vld [vmem:[#allocation8 + $0x70] sm:$0xff] }
  0x68   :  { %484 = vmatpush3.bf16.msra.mxu0 %v552_v29  ;;  %v523_v54 = vpack.c.bf16 %v198_v53, %v197_v52  ;;  %v525_v57 = vpack.c.bf16 %v216_v56, %v215_v55  ;;  %v200_v59 = vld [vmem:[#allocation8 + $0x78] sm:$0xff] }
  0x69   :  { %508 = vmatpush3.bf16.msra.mxu1 %v507_v30  ;;  %489 = vmatprep.subr.bf16.mxu0 %v707_v23  ;;  %v527_v60 = vpack.c.bf16 %v200_v59, %v199_v58 }
  0x6a   :  { %510 = vmatprep.subr.bf16.mxu1 %v509_v32 }
  0x6b   :  { %486 = vmatmul.mubr.msk.bf16.vlgmr.msra.gmra.mrb[4].mxu0 %vm118_vm0, %v818_v5 }
  0x6c   :  { %490 = vmatpush3.bf16.msra.mxu0 %v553_v36  ;;  %493 = vmatprep.mubr.msk.bf16.mxu0 %vm708_vm1, %v707_v23 }
  0x6d   :  { %512 = vmatpush3.bf16.msra.mxu1 %v511_v37  ;;  %491 = vmatprep.subr.bf16.mxu0 %v707_v23 }
  0x6e   :  { %514 = vmatprep.subr.bf16.mxu1 %v513_v38 }
  0x70   :  { %492 = vmatpush3.bf16.msra.mxu0 %v554_v43 }
  0x71   :  { %516 = vmatpush3.bf16.msra.mxu1 %v515_v44 }
  0x72   :  { %518 = vmatprep.subr.bf16.mxu1 %v517_v45 }
  0x73   :  { %494 = vmatmul.mubr.msk.bf16.vlgmr.msra.gmra.mrb[8].mxu0 %vm118_vm0, %v92_v19  ;;  %v439_v19 = vld [vmem:[%s858_s6] ss:$0 sm:$0xff] }
  0x75   :  { %520 = vmatpush3.bf16.msra.mxu1 %v519_v50 }
  0x76   :  { %522 = vmatprep.subr.bf16.mxu1 %v521_v51 }
  0x79   :  { %524 = vmatpush3.bf16.msra.mxu1 %v523_v54 }
  0x7a   :  { %526 = vmatprep.subr.bf16.mxu1 %v525_v57 }
  0x7d   :  { %528 = vmatpush3.bf16.msra.mxu1 %v527_v60 }
  0xd1   :  { %v167_v61 = vpop.permute.xlu0 %166  ;;  %v171_v1 = vpop.permute.xlu1 %170 }
  0xd2   :  { %v174_v62 = vsel %vm118_vm0, %v818_v5, %v167_v61 }
  0xd5   :  { %v169_v63 = vpop.permute.xlu0 %168 }
  0xd6   :  { %v177_v0 = vsel %vm175_vm2, %v174_v62, %v169_v63 }
  0xd7   :  { %v180_v2 = vsel %vm178_vm3, %v177_v0, %v171_v1 }
  0xd8   :  { %v182_v3 = vunpack.c.l.bf16 %v180_v2 }
 0x136   :  { %v156_v4 = vpop.f32.mrb[0].mxu0 }
 0x137   :  { %v158_v6 = vpop.f32.mrb[1].mxu0  ;;  %v183_v9 = vmul.f32 %v182_v3, %v156_v4 }
 0x138   :  { %v160_v7 = vpop.f32.mrb[2].mxu0  ;;  %v184_v8 = vmul.f32 %v182_v3, %v158_v6 }
 0x139   :  { %v161_v10 = vpop.f32.mrb[3].mxu0 }
 0x13a   :  { %403 = vmatprep.mubr.f32.mxu1 %v184_v8 }
 0x13b   :  { %404 = vmatmul.mubr.f32.vlgmr.msra.gmra.mrb[0].mxu1 %v183_v9 }
 0x13e   :  { %v273_v11 = vpop.f32.mrb[4].mxu0 }
 0x13f   :  { %v487_v12 = vpop.f32.mrb[5].mxu0 }
 0x140   :  { %v276_v13 = vpop.f32.mrb[6].mxu0 }
 0x141   :  { %v488_v14 = vpop.f32.mrb[7].mxu0 }
 0x146   :  { %v325_v5 = vpop.f32.mrb[8].mxu0 }
 0x147   :  { %v326_v15 = vadd.f32 %v325_v5, %v273_v11  ;;  %v495_v16 = vpop.f32.mrb[9].mxu0 }
 0x148   :  { %v328_v17 = vpop.f32.mrb[10].mxu0 }
 0x149   :  { %v496_v18 = vpop.f32.mrb[11].mxu0  ;;  %v338_v22 = vadd.f32 %v439_v19, %v326_v15 }
 0x20e   :  { %v478_v20 = vpop.f32.mrb[0].mxu1 }
 0x20f   :  { %v479_v21 = vpop.f32.mrb[1].mxu1 }
 0x210   :  { %v480_v23 = vadd.f32 %v479_v21, %v478_v20 }
 0x212   :  { %v406_v24 = vadd.f32 %v480_v23, %v338_v22 }
 0x214   :  { %409 = vst [vmem:[#allocation11] sm:$0xff] %v406_v24 }
 0x215   :  { %676 = shalt.err (!%p673_p2)
}
 0x216   :  { %s677_s6 = scalar_lea.hbm %s859_s7, 128 }
 0x217   :  { %p678_p3 = scmp.ne.s32.totalorder %s859_s7, %s677_s6  ;;  %p681_p4 = scmp.lt.u32.totalorder %s677_s6, %s859_s7 }
 0x219   :  { %p683_p5 = pnand %p681_p4, %p678_p3 }
 0x21b   :  { %686 = shalt.err (!%p683_p5)
}
 0x21c   :  { %419 = dma.vmem_to_hbm [thread:$0]  %s417_s21, 128, %s859_s7, [#allocation4]  }
 0x21d   :  { %693 = dma.done.wait [#allocation4], 128  }
 0x21e   :  { %694 = vsyncadd [#allocation4], 4294967168 }
 0x21f   :  { %423 = vsyncpa [#allocation3], 1 }
 0x220   :  { %424 = vsyncpa [#allocation6], 1 }
 0x221   :  { %425 = vsyncpa [#allocation9], 1 }
 0x222   :  { %426 = vsyncpa [#allocation4], 1 }

</bundles_post_ra>
